<compile_context>
chip_gen: v5e
topology: v5e:2x2
jax: 0.10.0
libtpu: 0.0.40
codegen_flags: <defaults>
</compile_context>

<pallas_src>
import functools

import jax
import jax.numpy as jnp
from jax.experimental import pallas as pl
from jax.experimental.pallas import tpu as pltpu


# ------------------------------ kernels -------------------------------------

def _linear_kernel_single(x_ref, w_ref, b_ref, o_ref):
    """Single K-step fast path: no accumulator scratch, no zero-init pass."""
    acc = jax.lax.dot_general(
        x_ref[...], w_ref[...],
        dimension_numbers=(((1,), (1,)), ((), ())),   # contract K of x(tm,K), W(tn,K)
        preferred_element_type=jnp.float32,
    )
    o_ref[...] = (acc + b_ref[...]).astype(o_ref.dtype)


def _linear_kernel_multi(x_ref, w_ref, b_ref, o_ref, acc_ref):
    """Multi K-step path: f32 VMEM accumulator, bias-add/cast at last k only."""
    k = pl.program_id(2)

    @pl.when(k == 0)
    def _():
        acc_ref[...] = jnp.zeros_like(acc_ref)

    # Contract x (tm, tk) with W (tn, tk) over their last dims -> (tm, tn).
    # Feeds the MXU directly from the PyTorch (N, K) weight layout.
    acc_ref[...] += jax.lax.dot_general(
        x_ref[...], w_ref[...],
        dimension_numbers=(((1,), (1,)), ((), ())),
        preferred_element_type=jnp.float32,
    )

    @pl.when(k == pl.num_programs(2) - 1)
    def _():
        o_ref[...] = (acc_ref[...] + b_ref[...]).astype(o_ref.dtype)


# ------------------------------ helpers -------------------------------------

def _cdiv(a, b):
    return (a + b - 1) // b


def _round_up(a, b):
    return _cdiv(a, b) * b


def _pick_tile(dim, max_tile, granularity):
    """Largest tile <= max_tile (rounded to granularity) with balanced blocks,
    so the last block is not mostly zero padding."""
    padded = _round_up(dim, granularity)
    cap = max(granularity, min(_round_up(max_tile, granularity), padded))
    n_blocks = _cdiv(padded, cap)
    return _round_up(_cdiv(padded, n_blocks), granularity)


@functools.lru_cache(maxsize=1)
def _vmem_limit_bytes():
    # Generation-aware scoped-VMEM limit: ~75% of physical VMEM, capped.
    # v5e/v6e (128 MiB physical) -> 96 MiB; v7x (64 MiB per TC) -> 48 MiB.
    try:
        cap = int(pltpu.get_tpu_info().vmem_capacity_bytes)
        return max(32 << 20, min(96 << 20, (cap * 3) // 4))
    except Exception:
        return 48 << 20   # safe default on every generation


# ------------------------------ wrapper -------------------------------------

@functools.partial(
    jax.jit, static_argnames=("use_bf16", "tm_max", "tn_max", "tk_max"))
def linear_forward(x, weight, bias, *, use_bf16=True,
                   tm_max=512, tn_max=512, tk_max=2048):
    """y = x @ weight.T + bias.

    x:      (B, in_features)
    weight: (out_features, in_features)   -- PyTorch layout, NOT transposed
    bias:   (out_features,)
    """
    B, K = x.shape
    N, K2 = weight.shape
    assert K == K2, (K, K2)
    out_dtype = x.dtype

    # MXU is natively bf16 on v5e/v6e/v7x; accumulation stays f32 in-kernel.
    compute_dtype = (jnp.bfloat16
                     if (use_bf16 and x.dtype == jnp.float32) else x.dtype)
    in_b = jnp.dtype(compute_dtype).itemsize
    out_b = jnp.dtype(out_dtype).itemsize

    vmem_limit = _vmem_limit_bytes()

    # Tile selection (sublane multiple of 8, lane multiple of 128), balanced
    # across blocks to minimise zero-padding waste.
    tm = _pick_tile(B, tm_max, 8)
    tn = _pick_tile(N, tn_max, 128)
    tk = _pick_tile(K, tk_max, 128)

    grid_m = _cdiv(B, tm)
    grid_n = _cdiv(N, tn)

    # v7x megacore: keep >=2 "parallel" blocks so both TensorCores get work
    # (only applied when the split is padding-free; harmless on 1-TC chips).
    if grid_m * grid_n == 1:
        np0 = _round_up(N, 128)
        if np0 >= 256 and np0 % 256 == 0:
            tn = np0 // 2
            grid_n = 2

    # Keep the double-buffered working set under the scoped-VMEM budget by
    # shrinking tk (tm/tn are the levers that cut HBM bytes; tk only
    # amortizes per-grid-step overhead and accumulator RMW passes).
    def _footprint(tk_):
        return (2 * (tm + tn) * tk_ * in_b            # x / W double buffers
                + 2 * tm * tn * out_b                 # output double buffer
                + tm * tn * 4                         # f32 accumulator
                + 2 * tn * 4)                         # bias

    budget = int(vmem_limit * 0.8)
    while _footprint(tk) > budget and tk > 128:
        tk = max(128, _round_up(tk // 2, 128))

    Mp, Np, Kp = _round_up(B, tm), _round_up(N, tn), _round_up(K, tk)
    grid_m, grid_n, grid_k = Mp // tm, Np // tn, Kp // tk

    # Cast + zero-pad to tile multiples.  Zeros in K contribute nothing to the
    # contraction; padded M/N rows/cols are sliced off the output.
    xp = x.astype(compute_dtype)
    wp = weight.astype(compute_dtype)
    if Mp != B or Kp != K:
        xp = jnp.pad(xp, ((0, Mp - B), (0, Kp - K)))
    if Np != N or Kp != K:
        wp = jnp.pad(wp, ((0, Np - N), (0, Kp - K)))
    bp = bias.astype(jnp.float32).reshape(1, N)
    if Np != N:
        bp = jnp.pad(bp, ((0, 0), (0, Np - N)))

    # Actual streamed HBM bytes: W is re-read once per M-block, x once per
    # N-block (their block indices below are independent of i / j).
    cost = pl.CostEstimate(
        flops=2 * Mp * Np * Kp,
        transcendentals=0,
        bytes_accessed=(grid_m * wp.size + grid_n * xp.size) * in_b
        + Mp * Np * out_b + grid_m * bp.size * 4,
    )

    if grid_k == 1:
        # Single-K fast path: no scratch, no zero-init, direct store.
        out = pl.pallas_call(
            _linear_kernel_single,
            out_shape=jax.ShapeDtypeStruct((Mp, Np), out_dtype),
            grid=(grid_m, grid_n),
            in_specs=[
                pl.BlockSpec((tm, Kp), lambda i, j: (i, 0)),   # x tile
                pl.BlockSpec((tn, Kp), lambda i, j: (j, 0)),   # W tile (N,K)
                pl.BlockSpec((1, tn), lambda i, j: (0, j)),    # bias tile
            ],
            out_specs=pl.BlockSpec((tm, tn), lambda i, j: (i, j)),
            compiler_params=pltpu.CompilerParams(
                dimension_semantics=("parallel", "parallel"),
                vmem_limit_bytes=vmem_limit,
            ),
            cost_estimate=cost,
        )(xp, wp, bp)
    else:
        out = pl.pallas_call(
            _linear_kernel_multi,
            out_shape=jax.ShapeDtypeStruct((Mp, Np), out_dtype),
            grid=(grid_m, grid_n, grid_k),
            in_specs=[
                pl.BlockSpec((tm, tk), lambda i, j, k: (i, k)),   # x tile
                pl.BlockSpec((tn, tk), lambda i, j, k: (j, k)),   # W tile (N,K)
                pl.BlockSpec((1, tn), lambda i, j, k: (0, j)),    # bias tile
            ],
            out_specs=pl.BlockSpec((tm, tn), lambda i, j, k: (i, j)),
            scratch_shapes=[pltpu.VMEM((tm, tn), jnp.float32)],
            compiler_params=pltpu.CompilerParams(
                dimension_semantics=("parallel", "parallel", "arbitrary"),
                vmem_limit_bytes=vmem_limit,
            ),
            cost_estimate=cost,
        )(xp, wp, bp)

    if Mp != B or Np != N:
        out = out[:B, :N]
    return out


# ------------------------------ module mirror -------------------------------

class Linear:
    """Mirror of the PyTorch module: forward(x, _) -> nn.Linear(x)."""

    def __init__(self, in_features, out_features, key, use_bf16=True):
        kw, kb = jax.random.split(key)
        bound = 1.0 / (in_features ** 0.5)  # torch nn.Linear default init
        self.weight = jax.random.uniform(
            kw, (out_features, in_features), jnp.float32, -bound, bound)
        self.bias = jax.random.uniform(
            kb, (out_features,), jnp.float32, -bound, bound)
        self.use_bf16 = use_bf16

    def forward(self, x, _):
        return linear_forward(x, self.weight, self.bias,
                              use_bf16=self.use_bf16)


def _ref_linear(x, weight, bias, use_bf16):
    """Plain-JAX reference with the same operand precision as the kernel."""
    if use_bf16 and x.dtype == jnp.float32:
        xc, wc = x.astype(jnp.bfloat16), weight.astype(jnp.bfloat16)
    else:
        xc, wc = x, weight
    y = jax.lax.dot_general(xc, wc, (((1,), (1,)), ((), ())),
                            preferred_element_type=jnp.float32)
    return (y + bias.astype(jnp.float32)).astype(x.dtype)


if __name__ == "__main__":
    unused = jnp.zeros((1,), jnp.float32)   # second forward arg is ignored

    # 1) Small spec-consistent shape: bf16 MXU path + single-K fast path.
    k_param, k_x = jax.random.split(jax.random.PRNGKey(0))
    mod = Linear(32, 64, k_param)
    x = jax.random.normal(k_x, (8, 32), jnp.float32)
    y = mod.forward(x, unused)
    jax.block_until_ready(y)
    assert y.shape == (8, 64)
    y_ref_bf16 = _ref_linear(x, mod.weight, mod.bias, use_bf16=True)
    y_ref_f32 = x @ mod.weight.T + mod.bias
    assert jnp.allclose(y, y_ref_bf16, atol=1e-4, rtol=1e-4)
    assert jnp.allclose(y, y_ref_f32, atol=3e-2, rtol=3e-2)

    # 2) Multi-K-step accumulator path (forced via small tk_max), exact f32.
    k2w, k2x = jax.random.split(jax.random.PRNGKey(1))
    mod2 = Linear(512, 384, k2w, use_bf16=False)
    x2 = jax.random.normal(k2x, (192, 512), jnp.float32)
    y2 = linear_forward(x2, mod2.weight, mod2.bias, use_bf16=False,
                        tk_max=256)
    jax.block_until_ready(y2)
    y2_ref = x2 @ mod2.weight.T + mod2.bias
    assert jnp.allclose(y2, y2_ref, atol=1e-4, rtol=1e-4)

    # 3) Small-batch / wide-N: exercises the padding-free 2-N-block megacore
    #    split and the bf16 single-K path.
    k3w, k3x = jax.random.split(jax.random.PRNGKey(2))
    mod3 = Linear(256, 512, k3w)
    x3 = jax.random.normal(k3x, (8, 256), jnp.float32)
    y3 = mod3.forward(x3, unused)
    jax.block_until_ready(y3)
    y3_ref = _ref_linear(x3, mod3.weight, mod3.bias, use_bf16=True)
    assert y3.shape == (8, 512)
    assert jnp.allclose(y3, y3_ref, atol=1e-4, rtol=1e-4)

    print("KERNEL_OK")
</pallas_src>

<mosaic_0001>
module attributes {stable_mosaic.version = 11 : i64} {
  func.func @_linear_kernel_single(%arg0: i32, %arg1: i32, %arg2: memref<8x128xbf16, #tpu.memory_space<vmem>>, %arg3: memref<128x128xbf16, #tpu.memory_space<vmem>>, %arg4: memref<1x128xf32, #tpu.memory_space<vmem>>, %arg5: memref<8x128xf32, #tpu.memory_space<vmem>>) attributes {dimension_semantics = [#tpu.dimension_semantics<parallel>, #tpu.dimension_semantics<parallel>], iteration_bounds = array<i64: 1, 1>, scalar_prefetch = 0 : i64, scratch_operands = 0 : i64, tpu.core_type = #tpu.core_type<tc>, window_params = [{transform_indices = @transform_0, window_bounds = array<i64: 8, 128>}, {transform_indices = @transform_1, window_bounds = array<i64: 128, 128>}, {transform_indices = @transform_2, window_bounds = array<i64: 1, 128>}, {transform_indices = @transform_3, window_bounds = array<i64: 8, 128>}]} {
    %c0 = arith.constant 0 : index
    %c0_0 = arith.constant 0 : index
    %0 = vector.load %arg2[%c0, %c0_0] : memref<8x128xbf16, #tpu.memory_space<vmem>>, vector<8x128xbf16>
    %c0_1 = arith.constant 0 : index
    %c0_2 = arith.constant 0 : index
    %1 = vector.load %arg3[%c0_1, %c0_2] : memref<128x128xbf16, #tpu.memory_space<vmem>>, vector<128x128xbf16>
    %cst = arith.constant dense<0.000000e+00> : vector<8x128xf32>
    %2 = tpu.matmul %0, %1, %cst {dimension_numbers = #tpu.dot_dimension_numbers<[1], [1], [0], [0], [0, 0, 1, 0], [], []>} : vector<8x128xbf16>, vector<128x128xbf16>, vector<8x128xf32> -> vector<8x128xf32>
    %c0_3 = arith.constant 0 : index
    %c0_4 = arith.constant 0 : index
    %3 = vector.load %arg4[%c0_3, %c0_4] : memref<1x128xf32, #tpu.memory_space<vmem>>, vector<1x128xf32>
    %4 = vector.broadcast %3 : vector<1x128xf32> to vector<8x128xf32>
    %5 = arith.addf %2, %4 : vector<8x128xf32>
    %c0_5 = arith.constant 0 : index
    %c0_6 = arith.constant 0 : index
    %6 = vector.load %arg5[%c0_5, %c0_6] : memref<8x128xf32, #tpu.memory_space<vmem>>, vector<8x128xf32>
    tpu.vector_store %arg5[%c0_5, %c0_6], %5 {strides = array<i32>} : memref<8x128xf32, #tpu.memory_space<vmem>>, vector<8x128xf32>,
    return
  }
  func.func @transform_0(%arg0: i32, %arg1: i32) -> (i32, i32) {
    %c0_i32 = arith.constant 0 : i32
    %c0_i32_0 = arith.constant 0 : i32
    return %arg0, %c0_i32 : i32, i32
  }
  func.func @transform_1(%arg0: i32, %arg1: i32) -> (i32, i32) {
    %c0_i32 = arith.constant 0 : i32
    %c0_i32_0 = arith.constant 0 : i32
    return %arg1, %c0_i32 : i32, i32
  }
  func.func @transform_2(%arg0: i32, %arg1: i32) -> (i32, i32) {
    %c0_i32 = arith.constant 0 : i32
    %c0_i32_0 = arith.constant 0 : i32
    return %c0_i32, %arg1 : i32, i32
  }
  func.func @transform_3(%arg0: i32, %arg1: i32) -> (i32, i32) {
    %c0_i32 = arith.constant 0 : i32
    return %arg0, %arg1 : i32, i32
  }
}

</mosaic_0001>

<bundles_post_ra>
// kernel: linear_forward.1
= control target key start
LH: loop header
LB: loop body
LE: loop exit
PB: predicated region body
PF: predicated region fallthrough
CT: control target
= control target key end

     0   :  { %s236_s0 = inlined_call_operand.vmem [shape: bf16[8,128], index: 0, kind: input, shape index: {}]   ;;  %s237_s1 = inlined_call_operand.vmem [shape: bf16[128,128], index: 1, kind: input, shape index: {}]   ;;  %s238_s2 = inlined_call_operand.vmem [shape: f32[1,128], index: 2, kind: input, shape index: {}]   ;;  %s239_s3 = inlined_call_operand.hbm [shape: f32[8,128], index: 3, kind: output, shape index: {}]  }
   0x1   :  { %v153_v0 = vld [vmem:[%s237_s1 + $0x38] sm:$0xff] }
   0x2   :  { %84 = vmatpush.bf16.xpose.msra.mxu0 %v153_v0 }
   0x3   :  { %8 = vsyncpa [#allocation3], 0  ;;  %v152_v1 = vld [vmem:[%s237_s1 + $0x30] sm:$0xff]  ;;  %v151_v2 = vld [vmem:[%s237_s1 + $0x28] sm:$0xff]  ;;  %s182_s5 = smov [#allocation2]   ;;  %s105_s9 = sshll.u32 %s239_s3, 4  ;;  %s106_s9 = int_to_ptr.hbm [resolvable:$true] %s105_s9 }
   0x4   :  { %v150_v3 = vld [vmem:[%s237_s1 + $0x20] sm:$0xff]  ;;  %v149_v4 = vld [vmem:[%s237_s1 + $0x18] sm:$0xff]  ;;  %v148_v5 = vld [vmem:[%s237_s1 + $0x10] sm:$0xff]  ;;  %s103_s6 = sshll.u32 %s182_s5, 4  ;;  %s104_s6 = int_to_ptr.vmem [resolvable:$true] %s103_s6 }
   0x5   :  { %v147_v6 = vld [vmem:[%s237_s1 + $0x8] sm:$0xff]  ;;  %v146_v7 = vld [vmem:[%s237_s1] sm:$0xff] }
   0x6   :  { %v15_v8 = vld [vmem:[%s236_s0] sm:$0xf] }
   0x7   :  { %v155_v9 = vld [vmem:[%s238_s2] ss:$0 sm:$0xff] }
   0xa   :  { %85 = vmatpush.bf16.xpose.msra.mxu0 %v152_v1 }
  0x12   :  { %86 = vmatpush.bf16.xpose.msra.mxu0 %v151_v2 }
  0x1a   :  { %87 = vmatpush.bf16.xpose.msra.mxu0 %v150_v3 }
  0x22   :  { %88 = vmatpush.bf16.xpose.msra.mxu0 %v149_v4 }
  0x2a   :  { %89 = vmatpush.bf16.xpose.msra.mxu0 %v148_v5 }
  0x32   :  { %90 = vmatpush.bf16.xpose.msra.mxu0 %v147_v6 }
  0x3a   :  { %91 = vmatpush.bf16.xpose.msra.mxu0 %v146_v7 }
  0x41   :  { %92 = vmatmul.bf16.vlgmr.msra.gmra.mxu0 %v15_v8 }
  0xbe   :  { %v93_v10 = vpop.f32.mrf.mxu0 }
  0xbf   :  { %v94_v11 = vadd.f32 %v155_v9, %v93_v10 }
  0xc1   :  { %97 = vst [vmem:[#allocation2] sm:$0xff] %v94_v11 }
  0xc2   :  { %108 = dma.vmem_to_hbm [thread:$0]  %s104_s6, 128, %s106_s9, [#allocation3]  }
  0xc6   :  { %v95_v12 = vpop.f32.mrf.mxu0 }
  0xc7   :  { %180 = dma.done.wait [#allocation3], 128  }
  0xc8   :  { %181 = vsyncadd [#allocation3], 4294967168 }
  0xc9   :  { %113 = vsyncpa [#allocation3], 1 }

</bundles_post_ra>
